<compile_context>
chip_gen: v5e
topology: v5e:2x2
jax: 0.10.0
libtpu: 0.0.40
codegen_flags: <defaults>
</compile_context>

<pallas_src>
import numpy as np
import jax
import jax.numpy as jnp
from jax import lax
from jax.experimental import pallas as pl
from jax.experimental.pallas import tpu as pltpu

NQUBITS = 4
DIM = 2 ** NQUBITS          # 16
REPEAT = 6
TB = 512                    # batch tile on the lane axis (multiple of 128); sweep 256-1024


# ------------- circuit construction (host-side NumPy, built ONCE per weights) -------------
def _ry(t):
    c, s = np.cos(t / 2.0), np.sin(t / 2.0)
    return np.array([[c, -s], [s, c]], dtype=np.complex64)


def _rz(t):
    return np.array([[np.exp(-0.5j * t), 0.0], [0.0, np.exp(0.5j * t)]],
                    dtype=np.complex64)


def _yzy_layer(params, n):
    # per wire q: Ry(p[3q]) then Rz(p[3q+1]) then Ry(p[3q+2]);
    # qubit 0 is the most significant (leftmost kron factor), deepquantum convention.
    m = np.eye(1, dtype=np.complex64)
    for q in range(n):
        u = _ry(params[3 * q + 2]) @ _rz(params[3 * q + 1]) @ _ry(params[3 * q])
        m = np.kron(m, u)
    return m


def _cnot(n, ctrl, tgt):
    d = 2 ** n
    m = np.zeros((d, d), dtype=np.complex64)
    for k in range(d):
        j = k ^ (1 << (n - 1 - tgt)) if (k >> (n - 1 - ctrl)) & 1 else k
        m[j, k] = 1.0
    return m


def _ring_of_cnot(n):
    m = np.eye(2 ** n, dtype=np.complex64)
    for i in range(n):
        m = _cnot(n, i, (i + 1) % n) @ m
    return m


def build_circuit_unitary(weights, n):
    """BasicEntangleLayer(repeat=6) followed by a final YZYLayer (as in qcir)."""
    w = np.asarray(weights, dtype=np.float64)
    u = np.eye(2 ** n, dtype=np.complex64)
    ring = _ring_of_cnot(n)
    for r in range(REPEAT):
        u = _yzy_layer(w[3 * n * r: 3 * n * (r + 1)], n) @ u
        u = ring @ u
    u = _yzy_layer(w[3 * n * REPEAT: 3 * n * (REPEAT + 1)], n) @ u
    return u  # (D, D) complex64


def block_unitary(u):
    """Real (2D, 2D) block form [[Ur, -Ui], [Ui, Ur]] of a complex unitary."""
    ur = np.real(u).astype(np.float32)
    ui = np.imag(u).astype(np.float32)
    return np.block([[ur, -ui], [ui, ur]]).astype(np.float32)


def encode_states(angles):
    """Reference only: PauliEncoding(Y) then PauliEncoding(Z) on |0...0>.
    angles: (B, n) float32  ->  (D, B) complex64, one column per sample."""
    c = jnp.cos(angles / 2.0)
    s = jnp.sin(angles / 2.0)
    per_qubit = jnp.stack(
        [jnp.exp(-0.5j * angles) * c, jnp.exp(0.5j * angles) * s], axis=-1
    ).astype(jnp.complex64)  # (B, n, 2)
    b = angles.shape[0]
    phi = per_qubit[:, 0, :]
    for q in range(1, angles.shape[1]):
        phi = (phi[:, :, None] * per_qubit[:, q, :][:, None, :]).reshape(b, -1)
    return phi.T  # (D, B)


# --------------------------------- Pallas kernel ---------------------------------
def _amp_pair(x_q):
    """Per-qubit amplitudes of Rz(a) Ry(a) |0>, a = arcsin(x), as (1, TB) arrays.

    amp0 = e^{-ia/2} cos(a/2) = c^2 - i sc ;  amp1 = e^{+ia/2} sin(a/2) = cs + i s^2
    with c = cos(a/2), s = sin(a/2) from half-angle identities; the only
    transcendental-ish ops are sqrt / rsqrt (EUP), no divide on the VALU."""
    t = jnp.sqrt(1.0 - x_q * x_q)        # cos(a), a in (-pi/2, pi/2)
    u = 0.5 * (1.0 + t)                  # cos^2(a/2) >= 0.5
    r = lax.rsqrt(u)                     # 1 / cos(a/2)     (EUP)
    c = u * r                            # cos(a/2)
    s = 0.5 * x_q * r                    # sin(a/2)
    return c * c, -s * c, c * s, s * s   # amp0_r, amp0_i, amp1_r, amp1_i


def qnet_kernel(a_ref, x_ref, out_ref, p_scratch):
    # a_ref:     (2D, 2D) real block unitary [[Ur,-Ui],[Ui,Ur]] (resident, constant index)
    # x_ref:     (NQ, TB) raw inputs in (-1, 1), batch tile on the lane axis
    # p_scratch: (2D, TB) VMEM scratch holding [phi_r; phi_i] for a single MXU push
    rows = lax.broadcasted_iota(jnp.int32, (DIM, 1), 0)      # basis-state index k

    def qbit(q):  # qubit 0 = most-significant bit of k (deepquantum kron order)
        return ((rows >> (NQUBITS - 1 - q)) & 1) == 1        # (D, 1) bool

    # product-state encoding: phi[k, b] = prod_q amp_{bit_q(k)}(arcsin(x[q, b]))
    a0r, a0i, a1r, a1i = _amp_pair(x_ref[0:1, :])            # (1, TB) each
    bit = qbit(0)
    phi_r = jnp.where(bit, a1r, a0r)                         # (D, TB)
    phi_i = jnp.where(bit, a1i, a0i)
    for q in range(1, NQUBITS):                              # unrolled, NQUBITS = 4
        a0r, a0i, a1r, a1i = _amp_pair(x_ref[q:q + 1, :])
        bit = qbit(q)
        sr = jnp.where(bit, a1r, a0r)
        si = jnp.where(bit, a1i, a0i)
        phi_r, phi_i = phi_r * sr - phi_i * si, phi_r * si + phi_i * sr

    # complex U @ phi as a single real block matmul (one MXU push, no concat copy)
    p_scratch[0:DIM, :] = phi_r                              # sublane-aligned (16 = 2*8)
    p_scratch[DIM:2 * DIM, :] = phi_i
    res = jnp.dot(a_ref[...], p_scratch[...],
                  preferred_element_type=jnp.float32)        # (2D, TB)
    out_r = res[0:DIM, :]
    out_i = res[DIM:2 * DIM, :]
    probs = out_r * out_r + out_i * out_i                    # |phi_out|^2, (D, TB)

    # only <Z_0> is used downstream: diag(Z_0) = +1 for k < D/2, -1 otherwise
    h = DIM // 2
    meas0 = (jnp.sum(probs[0:h, :], axis=0, keepdims=True)
             - jnp.sum(probs[h:DIM, :], axis=0, keepdims=True))        # (1, TB)

    # sigmoid(4 * <Z_0>) via EUP tanh: sigmoid(z) = 0.5 * tanh(z/2) + 0.5
    out_ref[...] = 0.5 * jnp.tanh(2.0 * meas0) + 0.5


@jax.jit
def qnet_forward(x, a_block):
    """qnet.forward: sigmoid(4 * <Z_0>) per sample.

    x       : (B, NQUBITS) inputs in (-1, 1)
    a_block : (2D, 2D) real block form of the circuit unitary (built once, reused)."""
    b = x.shape[0]
    b_pad = ((b + TB - 1) // TB) * TB
    # transpose / pad / cast fused into this single jit; padded lanes carry x=0
    xt = jnp.zeros((NQUBITS, b_pad), jnp.float32).at[:, :b].set(x.T.astype(jnp.float32))

    out = pl.pallas_call(
        qnet_kernel,
        out_shape=jax.ShapeDtypeStruct((1, b_pad), jnp.float32),
        grid=(b_pad // TB,),
        in_specs=[
            pl.BlockSpec((2 * DIM, 2 * DIM), lambda i: (0, 0)),   # resident unitary
            pl.BlockSpec((NQUBITS, TB), lambda i: (0, i)),        # batch tile of x
        ],
        out_specs=pl.BlockSpec((1, TB), lambda i: (0, i)),        # lane-dense output tile
        scratch_shapes=[pltpu.VMEM((2 * DIM, TB), jnp.float32)],
        compiler_params=pltpu.CompilerParams(
            dimension_semantics=("parallel",)),                   # v7x: shard batch over TCs
    )(a_block.astype(jnp.float32), xt)
    return out[0, :b]                                             # (B,)


def qnet_forward_ref(x, u_complex):
    # pure-JAX reference (same math, no Pallas) for a sanity check
    angles = jnp.arcsin(x)
    phi = encode_states(angles)
    ks = jnp.arange(DIM)
    z0 = (1.0 - 2.0 * ((ks >> (NQUBITS - 1)) & 1)).astype(jnp.float32)   # diag of Z_0
    phi_out = u_complex @ phi
    probs = jnp.abs(phi_out) ** 2
    meas = z0 @ probs
    return jax.nn.sigmoid(4.0 * meas)


if __name__ == "__main__":
    key = jax.random.PRNGKey(0)
    kw, kx = jax.random.split(key)
    # qcir weight: uniform [0, 2*pi), length 21 * nqubits (deterministic init)
    weights = jax.random.uniform(kw, (21 * NQUBITS,),
                                 minval=0.0, maxval=2.0 * np.pi, dtype=jnp.float32)
    # inputs must lie in (-1, 1) for arcsin; lane-dense batch (pads to 2 grid steps of TB=512)
    BATCH = 1000
    x = jax.random.uniform(kx, (BATCH, NQUBITS),
                           minval=-0.99, maxval=0.99, dtype=jnp.float32)

    # circuit unitary depends only on the (fixed) weights: build ONCE, keep resident on device
    u_np = build_circuit_unitary(np.asarray(weights), NQUBITS)   # (D, D) complex64
    a_block = jnp.asarray(block_unitary(u_np))                   # (2D, 2D) float32

    y = jax.block_until_ready(qnet_forward(x, a_block))
    y_ref = np.asarray(qnet_forward_ref(x, jnp.asarray(u_np)))

    assert y.shape == (BATCH,)
    assert np.allclose(np.asarray(y), y_ref, atol=2e-5, rtol=2e-5)
    print("KERNEL_OK")
</pallas_src>

<mosaic_0001>
module attributes {stable_mosaic.version = 11 : i64} {
  func.func @qnet_kernel(%arg0: i32, %arg1: memref<32x32xf32, #tpu.memory_space<vmem>>, %arg2: memref<4x512xf32, #tpu.memory_space<vmem>>, %arg3: memref<1x512xf32, #tpu.memory_space<vmem>>, %arg4: memref<32x512xf32, #tpu.memory_space<vmem>>) attributes {dimension_semantics = [#tpu.dimension_semantics<parallel>], iteration_bounds = array<i64: 2>, scalar_prefetch = 0 : i64, scratch_operands = 1 : i64, tpu.core_type = #tpu.core_type<tc>, window_params = [{pipeline_mode = #tpu.pipeline_mode<synchronous>, transform_indices = @transform_0, window_bounds = array<i64: 32, 32>}, {transform_indices = @transform_1, window_bounds = array<i64: 4, 512>}, {transform_indices = @transform_2, window_bounds = array<i64: 1, 512>}]} {
    %0 = tpu.iota {dimensions = array<i32: 0>} : vector<16x1xi32>
    %c0 = arith.constant 0 : index
    %c0_0 = arith.constant 0 : index
    %1 = vector.load %arg2[%c0, %c0_0] : memref<4x512xf32, #tpu.memory_space<vmem>>, vector<1x512xf32>
    %2 = arith.mulf %1, %1 : vector<1x512xf32>
    %cst = arith.constant 1.000000e+00 : f32
    %3 = vector.broadcast %cst : f32 to vector<1x512xf32>
    %4 = arith.subf %3, %2 : vector<1x512xf32>
    %5 = math.sqrt %4 : vector<1x512xf32>
    %cst_1 = arith.constant 1.000000e+00 : f32
    %6 = vector.broadcast %cst_1 : f32 to vector<1x512xf32>
    %7 = arith.addf %6, %5 : vector<1x512xf32>
    %cst_2 = arith.constant 5.000000e-01 : f32
    %8 = vector.broadcast %cst_2 : f32 to vector<1x512xf32>
    %9 = arith.mulf %8, %7 : vector<1x512xf32>
    %10 = math.rsqrt %9 : vector<1x512xf32>
    %11 = arith.mulf %9, %10 : vector<1x512xf32>
    %cst_3 = arith.constant 5.000000e-01 : f32
    %12 = vector.broadcast %cst_3 : f32 to vector<1x512xf32>
    %13 = arith.mulf %12, %1 : vector<1x512xf32>
    %14 = arith.mulf %13, %10 : vector<1x512xf32>
    %15 = arith.mulf %11, %11 : vector<1x512xf32>
    %cst_4 = arith.constant 0.000000e+00 : f32
    %16 = vector.broadcast %cst_4 : f32 to vector<1x512xf32>
    %17 = arith.subf %16, %14 : vector<1x512xf32>
    %18 = arith.mulf %17, %11 : vector<1x512xf32>
    %19 = arith.mulf %11, %14 : vector<1x512xf32>
    %20 = arith.mulf %14, %14 : vector<1x512xf32>
    %c3_i32 = arith.constant 3 : i32
    %21 = vector.broadcast %c3_i32 : i32 to vector<16x1xi32>
    %22 = arith.shrsi %0, %21 : vector<16x1xi32>
    %c1_i32 = arith.constant 1 : i32
    %23 = vector.broadcast %c1_i32 : i32 to vector<16x1xi32>
    %24 = arith.andi %22, %23 : vector<16x1xi32>
    %c1_i32_5 = arith.constant 1 : i32
    %25 = vector.broadcast %c1_i32_5 : i32 to vector<16x1xi32>
    %26 = arith.cmpi eq, %24, %25 : vector<16x1xi32>
    %27 = vector.shape_cast %26 : vector<16x1xi1> to vector<16x1xi1>
    %28 = vector.broadcast %27 : vector<16x1xi1> to vector<16x512xi1>
    %29 = vector.shape_cast %19 : vector<1x512xf32> to vector<1x512xf32>
    %30 = vector.broadcast %29 : vector<1x512xf32> to vector<16x512xf32>
    %31 = vector.shape_cast %15 : vector<1x512xf32> to vector<1x512xf32>
    %32 = vector.broadcast %31 : vector<1x512xf32> to vector<16x512xf32>
    %33 = arith.select %28, %30, %32 : vector<16x512xi1>, vector<16x512xf32>
    %34 = vector.shape_cast %26 : vector<16x1xi1> to vector<16x1xi1>
    %35 = vector.broadcast %34 : vector<16x1xi1> to vector<16x512xi1>
    %36 = vector.shape_cast %20 : vector<1x512xf32> to vector<1x512xf32>
    %37 = vector.broadcast %36 : vector<1x512xf32> to vector<16x512xf32>
    %38 = vector.shape_cast %18 : vector<1x512xf32> to vector<1x512xf32>
    %39 = vector.broadcast %38 : vector<1x512xf32> to vector<16x512xf32>
    %40 = arith.select %35, %37, %39 : vector<16x512xi1>, vector<16x512xf32>
    %c1 = arith.constant 1 : index
    %c0_6 = arith.constant 0 : index
    %41 = vector.load %arg2[%c1, %c0_6] : memref<4x512xf32, #tpu.memory_space<vmem>>, vector<1x512xf32>
    %42 = arith.mulf %41, %41 : vector<1x512xf32>
    %cst_7 = arith.constant 1.000000e+00 : f32
    %43 = vector.broadcast %cst_7 : f32 to vector<1x512xf32>
    %44 = arith.subf %43, %42 : vector<1x512xf32>
    %45 = math.sqrt %44 : vector<1x512xf32>
    %cst_8 = arith.constant 1.000000e+00 : f32
    %46 = vector.broadcast %cst_8 : f32 to vector<1x512xf32>
    %47 = arith.addf %46, %45 : vector<1x512xf32>
    %cst_9 = arith.constant 5.000000e-01 : f32
    %48 = vector.broadcast %cst_9 : f32 to vector<1x512xf32>
    %49 = arith.mulf %48, %47 : vector<1x512xf32>
    %50 = math.rsqrt %49 : vector<1x512xf32>
    %51 = arith.mulf %49, %50 : vector<1x512xf32>
    %cst_10 = arith.constant 5.000000e-01 : f32
    %52 = vector.broadcast %cst_10 : f32 to vector<1x512xf32>
    %53 = arith.mulf %52, %41 : vector<1x512xf32>
    %54 = arith.mulf %53, %50 : vector<1x512xf32>
    %55 = arith.mulf %51, %51 : vector<1x512xf32>
    %cst_11 = arith.constant 0.000000e+00 : f32
    %56 = vector.broadcast %cst_11 : f32 to vector<1x512xf32>
    %57 = arith.subf %56, %54 : vector<1x512xf32>
    %58 = arith.mulf %57, %51 : vector<1x512xf32>
    %59 = arith.mulf %51, %54 : vector<1x512xf32>
    %60 = arith.mulf %54, %54 : vector<1x512xf32>
    %c2_i32 = arith.constant 2 : i32
    %61 = vector.broadcast %c2_i32 : i32 to vector<16x1xi32>
    %62 = arith.shrsi %0, %61 : vector<16x1xi32>
    %c1_i32_12 = arith.constant 1 : i32
    %63 = vector.broadcast %c1_i32_12 : i32 to vector<16x1xi32>
    %64 = arith.andi %62, %63 : vector<16x1xi32>
    %c1_i32_13 = arith.constant 1 : i32
    %65 = vector.broadcast %c1_i32_13 : i32 to vector<16x1xi32>
    %66 = arith.cmpi eq, %64, %65 : vector<16x1xi32>
    %67 = vector.shape_cast %66 : vector<16x1xi1> to vector<16x1xi1>
    %68 = vector.broadcast %67 : vector<16x1xi1> to vector<16x512xi1>
    %69 = vector.shape_cast %59 : vector<1x512xf32> to vector<1x512xf32>
    %70 = vector.broadcast %69 : vector<1x512xf32> to vector<16x512xf32>
    %71 = vector.shape_cast %55 : vector<1x512xf32> to vector<1x512xf32>
    %72 = vector.broadcast %71 : vector<1x512xf32> to vector<16x512xf32>
    %73 = arith.select %68, %70, %72 : vector<16x512xi1>, vector<16x512xf32>
    %74 = vector.shape_cast %66 : vector<16x1xi1> to vector<16x1xi1>
    %75 = vector.broadcast %74 : vector<16x1xi1> to vector<16x512xi1>
    %76 = vector.shape_cast %60 : vector<1x512xf32> to vector<1x512xf32>
    %77 = vector.broadcast %76 : vector<1x512xf32> to vector<16x512xf32>
    %78 = vector.shape_cast %58 : vector<1x512xf32> to vector<1x512xf32>
    %79 = vector.broadcast %78 : vector<1x512xf32> to vector<16x512xf32>
    %80 = arith.select %75, %77, %79 : vector<16x512xi1>, vector<16x512xf32>
    %81 = arith.mulf %33, %73 : vector<16x512xf32>
    %82 = arith.mulf %40, %80 : vector<16x512xf32>
    %83 = arith.subf %81, %82 : vector<16x512xf32>
    %84 = arith.mulf %33, %80 : vector<16x512xf32>
    %85 = arith.mulf %40, %73 : vector<16x512xf32>
    %86 = arith.addf %84, %85 : vector<16x512xf32>
    %c2 = arith.constant 2 : index
    %c0_14 = arith.constant 0 : index
    %87 = vector.load %arg2[%c2, %c0_14] : memref<4x512xf32, #tpu.memory_space<vmem>>, vector<1x512xf32>
    %88 = arith.mulf %87, %87 : vector<1x512xf32>
    %cst_15 = arith.constant 1.000000e+00 : f32
    %89 = vector.broadcast %cst_15 : f32 to vector<1x512xf32>
    %90 = arith.subf %89, %88 : vector<1x512xf32>
    %91 = math.sqrt %90 : vector<1x512xf32>
    %cst_16 = arith.constant 1.000000e+00 : f32
    %92 = vector.broadcast %cst_16 : f32 to vector<1x512xf32>
    %93 = arith.addf %92, %91 : vector<1x512xf32>
    %cst_17 = arith.constant 5.000000e-01 : f32
    %94 = vector.broadcast %cst_17 : f32 to vector<1x512xf32>
    %95 = arith.mulf %94, %93 : vector<1x512xf32>
    %96 = math.rsqrt %95 : vector<1x512xf32>
    %97 = arith.mulf %95, %96 : vector<1x512xf32>
    %cst_18 = arith.constant 5.000000e-01 : f32
    %98 = vector.broadcast %cst_18 : f32 to vector<1x512xf32>
    %99 = arith.mulf %98, %87 : vector<1x512xf32>
    %100 = arith.mulf %99, %96 : vector<1x512xf32>
    %101 = arith.mulf %97, %97 : vector<1x512xf32>
    %cst_19 = arith.constant 0.000000e+00 : f32
    %102 = vector.broadcast %cst_19 : f32 to vector<1x512xf32>
    %103 = arith.subf %102, %100 : vector<1x512xf32>
    %104 = arith.mulf %103, %97 : vector<1x512xf32>
    %105 = arith.mulf %97, %100 : vector<1x512xf32>
    %106 = arith.mulf %100, %100 : vector<1x512xf32>
    %c1_i32_20 = arith.constant 1 : i32
    %107 = vector.broadcast %c1_i32_20 : i32 to vector<16x1xi32>
    %108 = arith.shrsi %0, %107 : vector<16x1xi32>
    %c1_i32_21 = arith.constant 1 : i32
    %109 = vector.broadcast %c1_i32_21 : i32 to vector<16x1xi32>
    %110 = arith.andi %108, %109 : vector<16x1xi32>
    %c1_i32_22 = arith.constant 1 : i32
    %111 = vector.broadcast %c1_i32_22 : i32 to vector<16x1xi32>
    %112 = arith.cmpi eq, %110, %111 : vector<16x1xi32>
    %113 = vector.shape_cast %112 : vector<16x1xi1> to vector<16x1xi1>
    %114 = vector.broadcast %113 : vector<16x1xi1> to vector<16x512xi1>
    %115 = vector.shape_cast %105 : vector<1x512xf32> to vector<1x512xf32>
    %116 = vector.broadcast %115 : vector<1x512xf32> to vector<16x512xf32>
    %117 = vector.shape_cast %101 : vector<1x512xf32> to vector<1x512xf32>
    %118 = vector.broadcast %117 : vector<1x512xf32> to vector<16x512xf32>
    %119 = arith.select %114, %116, %118 : vector<16x512xi1>, vector<16x512xf32>
    %120 = vector.shape_cast %112 : vector<16x1xi1> to vector<16x1xi1>
    %121 = vector.broadcast %120 : vector<16x1xi1> to vector<16x512xi1>
    %122 = vector.shape_cast %106 : vector<1x512xf32> to vector<1x512xf32>
    %123 = vector.broadcast %122 : vector<1x512xf32> to vector<16x512xf32>
    %124 = vector.shape_cast %104 : vector<1x512xf32> to vector<1x512xf32>
    %125 = vector.broadcast %124 : vector<1x512xf32> to vector<16x512xf32>
    %126 = arith.select %121, %123, %125 : vector<16x512xi1>, vector<16x512xf32>
    %127 = arith.mulf %83, %119 : vector<16x512xf32>
    %128 = arith.mulf %86, %126 : vector<16x512xf32>
    %129 = arith.subf %127, %128 : vector<16x512xf32>
    %130 = arith.mulf %83, %126 : vector<16x512xf32>
    %131 = arith.mulf %86, %119 : vector<16x512xf32>
    %132 = arith.addf %130, %131 : vector<16x512xf32>
    %c3 = arith.constant 3 : index
    %c0_23 = arith.constant 0 : index
    %133 = vector.load %arg2[%c3, %c0_23] : memref<4x512xf32, #tpu.memory_space<vmem>>, vector<1x512xf32>
    %134 = arith.mulf %133, %133 : vector<1x512xf32>
    %cst_24 = arith.constant 1.000000e+00 : f32
    %135 = vector.broadcast %cst_24 : f32 to vector<1x512xf32>
    %136 = arith.subf %135, %134 : vector<1x512xf32>
    %137 = math.sqrt %136 : vector<1x512xf32>
    %cst_25 = arith.constant 1.000000e+00 : f32
    %138 = vector.broadcast %cst_25 : f32 to vector<1x512xf32>
    %139 = arith.addf %138, %137 : vector<1x512xf32>
    %cst_26 = arith.constant 5.000000e-01 : f32
    %140 = vector.broadcast %cst_26 : f32 to vector<1x512xf32>
    %141 = arith.mulf %140, %139 : vector<1x512xf32>
    %142 = math.rsqrt %141 : vector<1x512xf32>
    %143 = arith.mulf %141, %142 : vector<1x512xf32>
    %cst_27 = arith.constant 5.000000e-01 : f32
    %144 = vector.broadcast %cst_27 : f32 to vector<1x512xf32>
    %145 = arith.mulf %144, %133 : vector<1x512xf32>
    %146 = arith.mulf %145, %142 : vector<1x512xf32>
    %147 = arith.mulf %143, %143 : vector<1x512xf32>
    %cst_28 = arith.constant 0.000000e+00 : f32
    %148 = vector.broadcast %cst_28 : f32 to vector<1x512xf32>
    %149 = arith.subf %148, %146 : vector<1x512xf32>
    %150 = arith.mulf %149, %143 : vector<1x512xf32>
    %151 = arith.mulf %143, %146 : vector<1x512xf32>
    %152 = arith.mulf %146, %146 : vector<1x512xf32>
    %c0_i32 = arith.constant 0 : i32
    %153 = vector.broadcast %c0_i32 : i32 to vector<16x1xi32>
    %154 = arith.shrsi %0, %153 : vector<16x1xi32>
    %c1_i32_29 = arith.constant 1 : i32
    %155 = vector.broadcast %c1_i32_29 : i32 to vector<16x1xi32>
    %156 = arith.andi %154, %155 : vector<16x1xi32>
    %c1_i32_30 = arith.constant 1 : i32
    %157 = vector.broadcast %c1_i32_30 : i32 to vector<16x1xi32>
    %158 = arith.cmpi eq, %156, %157 : vector<16x1xi32>
    %159 = vector.shape_cast %158 : vector<16x1xi1> to vector<16x1xi1>
    %160 = vector.broadcast %159 : vector<16x1xi1> to vector<16x512xi1>
    %161 = vector.shape_cast %151 : vector<1x512xf32> to vector<1x512xf32>
    %162 = vector.broadcast %161 : vector<1x512xf32> to vector<16x512xf32>
    %163 = vector.shape_cast %147 : vector<1x512xf32> to vector<1x512xf32>
    %164 = vector.broadcast %163 : vector<1x512xf32> to vector<16x512xf32>
    %165 = arith.select %160, %162, %164 : vector<16x512xi1>, vector<16x512xf32>
    %166 = vector.shape_cast %158 : vector<16x1xi1> to vector<16x1xi1>
    %167 = vector.broadcast %166 : vector<16x1xi1> to vector<16x512xi1>
    %168 = vector.shape_cast %152 : vector<1x512xf32> to vector<1x512xf32>
    %169 = vector.broadcast %168 : vector<1x512xf32> to vector<16x512xf32>
    %170 = vector.shape_cast %150 : vector<1x512xf32> to vector<1x512xf32>
    %171 = vector.broadcast %170 : vector<1x512xf32> to vector<16x512xf32>
    %172 = arith.select %167, %169, %171 : vector<16x512xi1>, vector<16x512xf32>
    %173 = arith.mulf %129, %165 : vector<16x512xf32>
    %174 = arith.mulf %132, %172 : vector<16x512xf32>
    %175 = arith.subf %173, %174 : vector<16x512xf32>
    %176 = arith.mulf %129, %172 : vector<16x512xf32>
    %177 = arith.mulf %132, %165 : vector<16x512xf32>
    %178 = arith.addf %176, %177 : vector<16x512xf32>
    %c0_31 = arith.constant 0 : index
    %c0_32 = arith.constant 0 : index
    %179 = vector.load %arg4[%c0_31, %c0_32] : memref<32x512xf32, #tpu.memory_space<vmem>>, vector<16x512xf32>
    tpu.vector_store %arg4[%c0_31, %c0_32], %175 {strides = array<i32>} : memref<32x512xf32, #tpu.memory_space<vmem>>, vector<16x512xf32>,
    %c16 = arith.constant 16 : index
    %c0_33 = arith.constant 0 : index
    %180 = vector.load %arg4[%c16, %c0_33] : memref<32x512xf32, #tpu.memory_space<vmem>>, vector<16x512xf32>
    tpu.vector_store %arg4[%c16, %c0_33], %178 {strides = array<i32>} : memref<32x512xf32, #tpu.memory_space<vmem>>, vector<16x512xf32>,
    %c0_34 = arith.constant 0 : index
    %c0_35 = arith.constant 0 : index
    %181 = vector.load %arg1[%c0_34, %c0_35] : memref<32x32xf32, #tpu.memory_space<vmem>>, vector<32x32xf32>
    %c0_36 = arith.constant 0 : index
    %c0_37 = arith.constant 0 : index
    %182 = vector.load %arg4[%c0_36, %c0_37] : memref<32x512xf32, #tpu.memory_space<vmem>>, vector<32x512xf32>
    %cst_38 = arith.constant dense<0.000000e+00> : vector<32x512xf32>
    %183 = tpu.matmul %181, %182, %cst_38 {dimension_numbers = #tpu.dot_dimension_numbers<[1], [0], [0], [1], [0, 0, 1, 1], [], []>} : vector<32x32xf32>, vector<32x512xf32>, vector<32x512xf32> -> vector<32x512xf32>
    %184 = vector.extract_strided_slice %183 {offsets = [0, 0], sizes = [16, 512], strides = [1, 1]} : vector<32x512xf32> to vector<16x512xf32>
    %185 = vector.extract_strided_slice %183 {offsets = [16, 0], sizes = [16, 512], strides = [1, 1]} : vector<32x512xf32> to vector<16x512xf32>
    %186 = arith.mulf %184, %184 : vector<16x512xf32>
    %187 = arith.mulf %185, %185 : vector<16x512xf32>
    %188 = arith.addf %186, %187 : vector<16x512xf32>
    %189 = vector.extract_strided_slice %188 {offsets = [0, 0], sizes = [8, 512], strides = [1, 1]} : vector<16x512xf32> to vector<8x512xf32>
    %cst_39 = arith.constant dense<0.000000e+00> : vector<512xf32>
    %190 = vector.multi_reduction <add>, %189, %cst_39 [0] : vector<8x512xf32> to vector<512xf32>
    %191 = vector.shape_cast %190 : vector<512xf32> to vector<1x512xf32>
    %192 = vector.extract_strided_slice %188 {offsets = [8, 0], sizes = [8, 512], strides = [1, 1]} : vector<16x512xf32> to vector<8x512xf32>
    %cst_40 = arith.constant dense<0.000000e+00> : vector<512xf32>
    %193 = vector.multi_reduction <add>, %192, %cst_40 [0] : vector<8x512xf32> to vector<512xf32>
    %194 = vector.shape_cast %193 : vector<512xf32> to vector<1x512xf32>
    %195 = arith.subf %191, %194 : vector<1x512xf32>
    %cst_41 = arith.constant 2.000000e+00 : f32
    %196 = vector.broadcast %cst_41 : f32 to vector<1x512xf32>
    %197 = arith.mulf %196, %195 : vector<1x512xf32>
    %198 = math.tanh %197 : vector<1x512xf32>
    %cst_42 = arith.constant 5.000000e-01 : f32
    %199 = vector.broadcast %cst_42 : f32 to vector<1x512xf32>
    %200 = arith.mulf %199, %198 : vector<1x512xf32>
    %cst_43 = arith.constant 5.000000e-01 : f32
    %201 = vector.broadcast %cst_43 : f32 to vector<1x512xf32>
    %202 = arith.addf %200, %201 : vector<1x512xf32>
    %c0_44 = arith.constant 0 : index
    %c0_45 = arith.constant 0 : index
    %203 = vector.load %arg3[%c0_44, %c0_45] : memref<1x512xf32, #tpu.memory_space<vmem>>, vector<1x512xf32>
    tpu.vector_store %arg3[%c0_44, %c0_45], %202 {strides = array<i32>} : memref<1x512xf32, #tpu.memory_space<vmem>>, vector<1x512xf32>,
    return
  }
  func.func @transform_0(%arg0: i32) -> (i32, i32) {
    %c0_i32 = arith.constant 0 : i32
    %c0_i32_0 = arith.constant 0 : i32
    %c0_i32_1 = arith.constant 0 : i32
    return %c0_i32, %c0_i32_0 : i32, i32
  }
  func.func @transform_1(%arg0: i32) -> (i32, i32) {
    %c0_i32 = arith.constant 0 : i32
    %c0_i32_0 = arith.constant 0 : i32
    return %c0_i32, %arg0 : i32, i32
  }
  func.func @transform_2(%arg0: i32) -> (i32, i32) {
    %c0_i32 = arith.constant 0 : i32
    %c0_i32_0 = arith.constant 0 : i32
    return %c0_i32, %arg0 : i32, i32
  }
}

</mosaic_0001>

<bundles_post_ra>
// kernel: qnet_forward.1
= control target key start
LH: loop header
LB: loop body
LE: loop exit
PB: predicated region body
PF: predicated region fallthrough
CT: control target
= control target key end

     0   :  { %7 = vsyncpa [#allocation4], 0  ;;  %s1979_s0 = inlined_call_operand.vmem [shape: f32[32,32], index: 0, kind: input, shape index: {}]   ;;  %s1980_s1 = inlined_call_operand.vmem [shape: f32[4,1024], index: 1, kind: input, shape index: {}]   ;;  %s1981_s2 = inlined_call_operand.hbm [shape: f32[1,1024], index: 2, kind: output, shape index: {}]  }
   0x1   :  { %9 = vsyncpa [#allocation4 + $0x1], 0  ;;  %s1204_s9 = smov 0   ;;  %s1206_s10 = smov 0  }
   0x2   :  { %s1208_s11 = smov 0   ;;  %s1210_s12 = smov 0  }
   0x3 LB: > { %s1031_s13 = sadd.s32 4294967295, %s1187_s12   ;;  %s1032_s14 = sadd.s32 4294967294, %s1187_s12   ;;  %s1187_s12 = sphi %s1210_s12, %s2101_s12   ;;  %s1183_s11 = sphi %s1208_s11, %s2100_s11   ;;  %s1179_s10 = sphi %s1206_s10, %s2099_s10   ;;  %s1175_s9 = sphi %s1204_s9, %s2098_s9  }
   0x4   : > { %s1227_s15 = sadd.s32 1, %s1187_s12   ;;  %s69_s16 = sadd.s32 1, %s1183_s11 }
   0x5   : > { %s66_s17 = ssub.s32 %s1187_s12, %s1227_s15  ;;  %p79_p0 = scmp.ne.s32.totalorder %s1183_s11, %s1179_s10 }
   0x6   : > { %p67_p1 = scmp.eq.s32.totalorder %s66_s17, 0  ;;  %p80_p2 = scmp.eq.s32.totalorder %s1031_s13, 1 }
   0x7   : > { %p85_p3 = scmp.ne.s32.totalorder %s1179_s10, %s1175_s9  ;;  %p86_p4 = scmp.eq.s32.totalorder %s1032_s14, 1 }
   0x8   : > { %s1237_s18 = scalar_select %p67_p1, %s1183_s11, %s69_s16  }
   0x9   : > { %p1239_p5 = por %p80_p2, %p79_p0  ;;  %p1243_p6 = por %p86_p4, %p85_p3 }
   0xa   : > { %p1035_p7 = scmp.ge.s32.totalorder %s1187_s12, 1  ;;  %p116_p8 = scmp.lt.s32.totalorder %s1187_s12, 3 }
   0xc   : > { %p117_p9 = pnand %p1035_p7, %p116_p8 }
   0xe   : > { %120 = sbr.rel (%p117_p9) target bundleno = 366 (0x16e), region = 28 }
  0x13   : > { %s1249_s21 = sshll.u32 %s1031_s13, 2  ;;  %v1982_v28 = vlaneseq  ;;  %s135_s7 = sand.u32 1, %s1179_s10  }
  0x14   : > { %p139_p10 = scmp.lt.s32.totalorder %s1249_s21, 7  ;;  %s1036_s8 = sshll.u32 %s135_s7, 2 }
  0x15   : > { %v1277_v51 = vshrl.u32 %v1982_v28, 7  ;;  %s968_s16 = scalar_lea.hbm %s1981_s2, %s1249_s21  ;;  %s137_s17 = scalar_lea.vmem [#allocation3], %s1036_s8 }
  0x16   : > { %s140_s22 = scalar_select %p139_p10, %s1249_s21, 7 }
  0x17   : > { %v1283_v61 = vadd.s32 8, %v1277_v51  ;;  %s958_s21 = scalar_lea.sflag [#allocation4], %s135_s7  ;;  %s1145_s28 = scalar_lea.hbm %s1981_s2, 8 }
  0x18   : > { %s1038_s23 = sshll.u32 %s140_s22, 2  ;;  %s970_s22 = sshll.u32 %s137_s17, 4  ;;  %s971_s22 = int_to_ptr.vmem [resolvable:$true] %s970_s22 }
  0x19   : > { %s142_s26 = scalar_lea.vmem %s1980_s1, %s1038_s23  ;;  %v184_v63 = vshra.s32 %v1283_v61, 3  ;;  %s972_s23 = sshll.u32 %s968_s16, 4  ;;  %s973_s23 = int_to_ptr.hbm [resolvable:$true] %s972_s23 }
  0x1a   : > { %v1256_v0 = vld [vmem:[%s142_s26] ss:$4 sm:$0xf]  ;;  %v1258_v1 = vld [vmem:[%s142_s26 + $0x1] ss:$4 sm:$0xf] }
  0x1b   : > { %v149_v2 = vmul.f32 %v1256_v0, %v1256_v0  ;;  %v247_v3 = vmul.f32 %v1258_v1, %v1258_v1  ;;  %v1264_v4 = vld [vmem:[%s142_s26 + $0x2] ss:$4 sm:$0xf]  ;;  %v1266_v5 = vld [vmem:[%s142_s26 + $0x3] ss:$4 sm:$0xf] }
  0x1c   : > { %v393_v6 = vmul.f32 %v1264_v4, %v1264_v4  ;;  %v539_v7 = vmul.f32 %v1266_v5, %v1266_v5  ;;  %s1139_s24 = sshra.s32 %s973_s23, 4  ;;  %s1140_s24 = int_to_ptr.hbm [resolvable:$true] %s1139_s24 }
  0x1d   : > { %v150_v8 = vsub.f32 1.0, %v149_v2  ;;  %v248_v9 = vsub.f32 1.0, %v247_v3  ;;  %v282_v3 = vshra.s32 %v1283_v61, 2  ;;  %s1141_s25 = scalar_lea.hbm %s1140_s24, 4  ;;  %p1146_p0 = scmp.lt.s32.totalorder %s1140_s24, %s1981_s2 }
  0x1e   : > { %v394_v10 = vsub.f32 1.0, %v393_v6  ;;  %v540_v11 = vsub.f32 1.0, %v539_v7  ;;  %p1142_p11 = scmp.ne.s32.totalorder %s1140_s24, %s1141_s25  ;;  %p1147_p1 = scmp.lt.s32.totalorder %s1145_s28, %s1141_s25 }
  0x1f   : > { %1101 = vrsqrt.f32 %v150_v8  ;;  %vm158_vm0 = vcmp.eq.f32.partialorder %v150_v8, inf  ;;  %vm160_vm1 = vcmp.eq.f32.partialorder %v150_v8, 0.0  ;;  %v161_v32 = vand.u32 2147483648, %v150_v8 }
  0x20   : > { %1103 = vrsqrt.f32 %v248_v9  ;;  %vm256_vm2 = vcmp.eq.f32.partialorder %v248_v9, inf  ;;  %vm258_vm3 = vcmp.eq.f32.partialorder %v248_v9, 0.0  ;;  %v259_v37 = vand.u32 2147483648, %v248_v9  ;;  %p1143_p12 = pnand %p1142_p11, %p1239_p5  ;;  %p1148_p2 = por %p1147_p1, %p1146_p0 }
  0x21   : > { %1105 = vrsqrt.f32 %v394_v10  ;;  %vm402_vm4 = vcmp.eq.f32.partialorder %v394_v10, inf  ;;  %vm404_vm5 = vcmp.eq.f32.partialorder %v394_v10, 0.0  ;;  %v405_v40 = vand.u32 2147483648, %v394_v10 }
  0x22   : > { %1107 = vrsqrt.f32 %v540_v11  ;;  %vm548_vm6 = vcmp.eq.f32.partialorder %v540_v11, inf  ;;  %v551_v44 = vand.u32 2147483648, %v540_v11  ;;  %vm550_vm7 = vcmp.eq.f32.partialorder %v540_v11, 0.0  ;;  %p1144_p13 = pneg %p1143_p12 }
  0x24   : > { %p1149_p3 = pnand %p1148_p2, %p1144_p13 }
  0x25   : > { %v1102_v12 = vpop.eup %1101 }
  0x26   : > { %v1104_v13 = vpop.eup %1103  ;;  %v152_v14 = vmul.f32 %v1102_v12, %v150_v8 }
  0x27   : > { %v1106_v15 = vpop.eup %1105  ;;  %v250_v16 = vmul.f32 %v1104_v13, %v248_v9 }
  0x28   : > { %v1108_v17 = vpop.eup %1107  ;;  %v153_v18 = vmul.f32 %v1102_v12, %v152_v14  ;;  %v396_v19 = vmul.f32 %v1106_v15, %v394_v10 }
  0x29   : > { %v251_v20 = vmul.f32 %v1104_v13, %v250_v16  ;;  %v542_v21 = vmul.f32 %v1108_v17, %v540_v11  ;;  %v1297_v16 = vand.u32 1, %v282_v3 }
  0x2a   : > { %v154_v22 = vmul.f32 0.5, %v153_v18  ;;  %v397_v23 = vmul.f32 %v1106_v15, %v396_v19 }
  0x2b   : > { %v252_v24 = vmul.f32 0.5, %v251_v20  ;;  %v543_v25 = vmul.f32 %v1108_v17, %v542_v21 }
  0x2c   : > { %v155_v26 = vsub.f32 1.5, %v154_v22  ;;  %v398_v27 = vmul.f32 0.5, %v397_v23 }
  0x2d   : > { %v253_v29 = vsub.f32 1.5, %v252_v24  ;;  %v544_v30 = vmul.f32 0.5, %v543_v25  ;;  %v274_v25 = vmul.f32 0.5, %v1258_v1  ;;  %v574_v1 = vand.u32 1, %v1283_v61 }
  0x2e   : > { %v156_v31 = vmul.f32 %v1102_v12, %v155_v26  ;;  %v399_v33 = vsub.f32 1.5, %v398_v27  ;;  %v176_v12 = vmul.f32 0.5, %v1256_v0  ;;  %v420_v26 = vmul.f32 0.5, %v1264_v4 }
  0x2f   : > { %v254_v34 = vmul.f32 %v1104_v13, %v253_v29  ;;  %v545_v35 = vsub.f32 1.5, %v544_v30  ;;  %v1294_v13 = vand.u32 1, %v184_v63 }
  0x30   : > { %v157_v36 = vmul.f32 %v156_v31, %v150_v8  ;;  %v400_v38 = vmul.f32 %v1106_v15, %v399_v33 }
  0x31   : > { %v255_v39 = vmul.f32 %v254_v34, %v248_v9  ;;  %v546_v41 = vmul.f32 %v1108_v17, %v545_v35  ;;  %v428_v17 = vshra.s32 %v1283_v61, 1  ;;  %vm188_vm15 = vcmp.eq.s32.totalorder %v1294_v13, 1 }
  0x32   : > { %v159_v42 = vsel %vm158_vm0, %v150_v8, %v157_v36  ;;  %v401_v43 = vmul.f32 %v400_v38, %v394_v10  ;;  %v566_v34 = vmul.f32 0.5, %v1266_v5 }
  0x33   : > { %v162_v45 = vsel %vm160_vm1, %v161_v32, %v159_v42  ;;  %v257_v46 = vsel %vm256_vm2, %v248_v9, %v255_v39  ;;  %v547_v47 = vmul.f32 %v546_v41, %v540_v11  ;;  %vm286_vm1 = vcmp.eq.s32.totalorder %v1297_v16, 1 }
  0x34   : > { %v163_v48 = vadd.f32 1.0, %v162_v45  ;;  %v260_v49 = vsel %vm258_vm3, %v259_v37, %v257_v46  ;;  %v403_v50 = vsel %vm402_vm4, %v394_v10, %v401_v43  ;;  %v1308_v32 = vand.u32 1, %v428_v17 }
  0x35   : > { %v261_v52 = vadd.f32 1.0, %v260_v49  ;;  %v406_v53 = vsel %vm404_vm5, %v405_v40, %v403_v50  ;;  %v549_v54 = vsel %vm548_vm6, %v540_v11, %v547_v47 }
  0x36   : > { %v164_v55 = vmul.f32 0.5, %v163_v48  ;;  %v407_v56 = vadd.f32 1.0, %v406_v53  ;;  %v552_v57 = vsel %vm550_vm7, %v551_v44, %v549_v54  ;;  %vm432_vm5 = vcmp.eq.s32.totalorder %v1308_v32, 1 }
  0x37   : > { %v262_v58 = vmul.f32 0.5, %v261_v52  ;;  %v553_v59 = vadd.f32 1.0, %v552_v57  ;;  %vm1358_vm7 = vcmp.eq.s32.totalorder %v574_v1, 1 }
  0x38   : > { %1109 = vrsqrt.f32 %v164_v55  ;;  %v1280_v60 = vmul.f32 0.5, %v407_v56  ;;  %vm171_vm8 = vweird.f32 %v164_v55 }
  0x39   : > { %1111 = vrsqrt.f32 %v262_v58  ;;  %v1285_v62 = vmul.f32 0.5, %v553_v59  ;;  %vm269_vm10 = vweird.f32 %v262_v58 }
  0x3a   : > { %1113 = vrsqrt.f32 %v1280_v60  ;;  %vm415_vm12 = vweird.f32 %v1280_v60 }
  0x3b   : > { %1115 = vrsqrt.f32 %v1285_v62  ;;  %vm561_vm3 = vweird.f32 %v1285_v62 }
  0x3e   : > { %v1110_v2 = vpop.eup %1109 }
  0x3f   : > { %v1112_v6 = vpop.eup %1111  ;;  %v166_v7 = vmul.f32 %v1110_v2, %v164_v55  ;;  %vm172_vm9 = vweird.f32 %v1110_v2 }
  0x40   : > { %v1114_v8 = vpop.eup %1113  ;;  %v264_v9 = vmul.f32 %v1112_v6, %v262_v58  ;;  %vm270_vm11 = vweird.f32 %v1112_v6  ;;  %vm173_vm14 = vmor %vm171_vm8, %vm172_vm9 }
  0x41   : > { %v1291_v10 = vpop.eup %1115  ;;  %v167_v11 = vmul.f32 %v1110_v2, %v166_v7  ;;  %v410_v14 = vmul.f32 %v1114_v8, %v1280_v60  ;;  %vm416_vm13 = vweird.f32 %v1114_v8  ;;  %vm271_vm0 = vmor %vm269_vm10, %vm270_vm11 }
  0x42   : > { %v265_v15 = vmul.f32 %v1112_v6, %v264_v9  ;;  %v556_v18 = vmul.f32 %v1291_v10, %v1285_v62  ;;  %vm417_vm2 = vmor %vm415_vm12, %vm416_vm13  ;;  %vm562_vm4 = vweird.f32 %v1291_v10  ;;  %vm717_vm12 = vcmask 261120  }
  0x43   : > { %v168_v19 = vmul.f32 0.5, %v167_v11  ;;  %v411_v20 = vmul.f32 %v1114_v8, %v410_v14  ;;  %vm563_vm6 = vmor %vm561_vm3, %vm562_vm4  ;;  %vm945_vm13 = vcmask 1040384  }
  0x44   : > { %v266_v21 = vmul.f32 0.5, %v265_v15  ;;  %v557_v0 = vmul.f32 %v1291_v10, %v556_v18 }
  0x45   : > { %v169_v22 = vsub.f32 1.5, %v168_v19  ;;  %v412_v23 = vmul.f32 0.5, %v411_v20 }
  0x46   : > { %v267_v24 = vsub.f32 1.5, %v266_v21  ;;  %v558_v27 = vmul.f32 0.5, %v557_v0 }
  0x47   : > { %v170_v29 = vmul.f32 %v1110_v2, %v169_v22  ;;  %v413_v30 = vsub.f32 1.5, %v412_v23 }
  0x48   : > { %v268_v31 = vmul.f32 %v1112_v6, %v267_v24  ;;  %v559_v33 = vsub.f32 1.5, %v558_v27 }
  0x49   : > { %v174_v35 = vsel %vm173_vm14, %v1110_v2, %v170_v29  ;;  %v414_v36 = vmul.f32 %v1114_v8, %v413_v30  ;;  %vm947_vm14 = vcmask 1042434  }
  0x4a   : > { %v175_v4 = vmul.f32 %v174_v35, %v164_v55  ;;  %v177_v37 = vmul.f32 %v176_v12, %v174_v35  ;;  %v272_v38 = vsel %vm271_vm0, %v1112_v6, %v268_v31  ;;  %v560_v42 = vmul.f32 %v1291_v10, %v559_v33 }
  0x4b   : > { %v273_v39 = vmul.f32 %v272_v38, %v262_v58  ;;  %v275_v40 = vmul.f32 %v274_v25, %v272_v38  ;;  %v418_v41 = vsel %vm417_vm2, %v1114_v8, %v414_v36 }
  0x4c   : > { %v1315_v43 = vmul.f32 %v175_v4, %v175_v4  ;;  %v179_v44 = vsub.f32 0.0, %v177_v37  ;;  %v1317_v5 = vmul.f32 %v177_v37, %v175_v4  ;;  %v1319_v45 = vmul.f32 %v177_v37, %v177_v37 }
  0x4d   : > { %v1322_v46 = vmul.f32 %v273_v39, %v273_v39  ;;  %v277_v47 = vsub.f32 0.0, %v275_v40  ;;  %v1324_v48 = vmul.f32 %v275_v40, %v273_v39  ;;  %v1326_v49 = vmul.f32 %v275_v40, %v275_v40 }
  0x4e   : > { %v1328_v50 = vmul.f32 %v179_v44, %v175_v4  ;;  %v194_v52 = vperm.slane %v1317_v5, 0  ;;  %v203_v53 = vperm.slane %v1315_v43, 0  ;;  %v220_v54 = vperm.slane %v1319_v45, 0 }
  0x4f   : > { %v1337_v55 = vmul.f32 %v277_v47, %v273_v39  ;;  %v292_v56 = vperm.slane %v1324_v48, 0  ;;  %v301_v57 = vperm.slane %v1322_v46, 0  ;;  %v318_v58 = vperm.slane %v1326_v49, 0 }
  0x50   : > { %v215_v59 = vsel %vm188_vm15, %v194_v52, %v203_v53  ;;  %v229_v61 = vperm.slane %v1328_v50, 0  ;;  %v419_v63 = vmul.f32 %v418_v41, %v1280_v60  ;;  %v421_v2 = vmul.f32 %v420_v26, %v418_v41 }
  0x51   : > { %v313_v3 = vsel %vm286_vm1, %v292_v56, %v301_v57  ;;  %v327_v6 = vperm.slane %v1337_v55, 0  ;;  %v564_v7 = vsel %vm563_vm6, %v1291_v10, %v560_v42  ;;  %v2003_v9 = vperm.slane %v1317_v5, 1 }
  0x52   : > { %v241_v60 = vsel %vm188_vm15, %v220_v54, %v229_v61  ;;  %v347_v11 = vmul.f32 %v313_v3, %v215_v59  ;;  %v1369_v12 = vmul.f32 %v419_v63, %v419_v63  ;;  %v423_v14 = vsub.f32 0.0, %v421_v2 }
  0x53   : > { %v339_v10 = vsel %vm286_vm1, %v318_v58, %v327_v6  ;;  %v379_v15 = vmul.f32 %v313_v3, %v241_v60  ;;  %v1377_v17 = vmul.f32 %v421_v2, %v419_v63  ;;  %v1379_v18 = vmul.f32 %v421_v2, %v421_v2 }
  0x54   : > { %v355_v19 = vmul.f32 %v339_v10, %v241_v60  ;;  %v371_v20 = vmul.f32 %v339_v10, %v215_v59  ;;  %v1381_v21 = vmul.f32 %v423_v14, %v419_v63  ;;  %v447_v0 = vperm.slane %v1369_v12, 0 }
  0x55   : > { %v2023_v22 = vperm.slane %v1377_v17, 0  ;;  %v2005_v23 = vperm.slane %v1379_v18, 0  ;;  %v565_v24 = vmul.f32 %v564_v7, %v1285_v62  ;;  %v567_v25 = vmul.f32 %v566_v34, %v564_v7 }
  0x56   : > { %v363_v26 = vsub.f32 %v347_v11, %v355_v19  ;;  %v387_v27 = vadd.f32 %v379_v15, %v371_v20  ;;  %v2008_v29 = vperm.slane %v1381_v21, 0  ;;  %v2004_v30 = vperm.slane %v1315_v43, 1 }
  0x57   : > { %v459_v31 = vsel %vm432_vm5, %v2023_v22, %v447_v0  ;;  %v1395_v33 = vmul.f32 %v565_v24, %v565_v24  ;;  %v569_v35 = vsub.f32 0.0, %v567_v25  ;;  %v1397_v36 = vmul.f32 %v567_v25, %v565_v24 }
  0x58   : > { %v485_v62 = vsel %vm432_vm5, %v2005_v23, %v2008_v29  ;;  %v493_v34 = vmul.f32 %v459_v31, %v363_v26  ;;  %v525_v1 = vmul.f32 %v459_v31, %v387_v27  ;;  %v1405_v4 = vmul.f32 %v567_v25, %v567_v25 }
  0x59   : > { %v501_v37 = vmul.f32 %v485_v62, %v387_v27  ;;  %v517_v38 = vmul.f32 %v485_v62, %v363_v26  ;;  %v1407_v39 = vmul.f32 %v569_v35, %v565_v24  ;;  %v582_v40 = vperm.slane %v1397_v36, 0 }
  0x5a   : > { %v591_v41 = vperm.slane %v1395_v33, 0  ;;  %v608_v42 = vperm.slane %v1405_v4, 0  ;;  %v216_v44 = vsel %vm188_vm15, %v2003_v9, %v2004_v30  ;;  %v1999_v47 = vperm.slane %v1319_v45, 1 }
  0x5b   : > { %v1419_v59 = vsub.f32 %v493_v34, %v501_v37  ;;  %v1421_v63 = vadd.f32 %v525_v1, %v517_v38  ;;  %v617_v2 = vperm.slane %v1407_v39, 0  ;;  %v2000_v3 = vperm.slane %v1328_v50, 1 }
  0x5c   : > { %v1431_v7 = vsel %vm1358_vm7, %v582_v40, %v591_v41  ;;  %v1983_v60 = vperm.slane %v1324_v48, 1  ;;  %v1984_v11 = vperm.slane %v1322_v46, 1  ;;  %v1985_v14 = vperm.slane %v1326_v49, 1 }
  0x5d   : > { %v1442_v10 = vsel %vm1358_vm7, %v608_v42, %v617_v2  ;;  %v669_v15 = vmul.f32 %v1431_v7, %v1421_v63  ;;  %v242_v19 = vsel %vm188_vm15, %v1999_v47, %v2000_v3  ;;  %v1986_v20 = vperm.slane %v1337_v55, 1 }
  0x5e   : > { %v661_v24 = vmul.f32 %v1442_v10, %v1419_v59  ;;  %v314_v25 = vsel %vm286_vm1, %v1983_v60, %v1984_v11  ;;  %v1987_v26 = vperm.slane %v1377_v17, 1  ;;  %v1998_v27 = vperm.slane %v1369_v12, 1 }
  0x5f   : > { %v340_v31 = vsel %vm286_vm1, %v1985_v14, %v1986_v20  ;;  %v348_v35 = vmul.f32 %v314_v25, %v216_v44  ;;  %v380_v62 = vmul.f32 %v314_v25, %v242_v19  ;;  %v1988_v34 = vperm.slane %v1379_v18, 1 }
  0x60   : > { %v677_v1 = vadd.f32 %v669_v15, %v661_v24  ;;  %v356_v37 = vmul.f32 %v340_v31, %v242_v19  ;;  %v372_v38 = vmul.f32 %v340_v31, %v216_v44  ;;  %v460_v28 = vsel %vm432_vm5, %v1987_v26, %v1998_v27 }
  0x61   : > { %v1997_v60 = vperm.slane %v1381_v21, 1  ;;  %v1989_v11 = vperm.slane %v1397_v36, 1  ;;  %v1990_v14 = vperm.slane %v1395_v33, 1  ;;  %v1991_v25 = vperm.slane %v1405_v4, 1 }
  0x62   : > { %742 = vmatpush.msra.mxu0 %v677_v1  ;;  %v364_v20 = vsub.f32 %v348_v35, %v356_v37  ;;  %v388_v15 = vadd.f32 %v380_v62, %v372_v38  ;;  %v1992_v44 = vperm.slane %v1407_v39, 1  ;;  %v1993_v19 = vperm.slane %v1317_v5, 2 }
  0x63   : > { %v486_v24 = vsel %vm432_vm5, %v1988_v34, %v1997_v60  ;;  %v1494_v31 = vsel %vm1358_vm7, %v1989_v11, %v1990_v14  ;;  %v1994_v35 = vperm.slane %v1315_v43, 2  ;;  %v1995_v62 = vperm.slane %v1319_v45, 2 }
  0x64   : > { %v494_v1 = vmul.f32 %v460_v28, %v364_v20  ;;  %v502_v37 = vmul.f32 %v486_v24, %v388_v15  ;;  %v518_v38 = vmul.f32 %v486_v24, %v364_v20  ;;  %v526_v26 = vmul.f32 %v460_v28, %v388_v15 }
  0x65   : > { %v1504_v34 = vsel %vm1358_vm7, %v1991_v25, %v1992_v44  ;;  %v217_v11 = vsel %vm188_vm15, %v1993_v19, %v1994_v35  ;;  %v1996_v14 = vperm.slane %v1328_v50, 2  ;;  %v2001_v20 = vperm.slane %v1324_v48, 2 }
  0x66   : > { %v1514_v28 = vsub.f32 %v494_v1, %v502_v37  ;;  %v1516_v15 = vadd.f32 %v526_v26, %v518_v38  ;;  %v2002_v24 = vperm.slane %v1322_v46, 2  ;;  %v2006_v25 = vperm.slane %v1326_v49, 2 }
  0x67   : > { %v243_v44 = vsel %vm188_vm15, %v1995_v62, %v1996_v14  ;;  %v2007_v19 = vperm.slane %v1337_v55, 2  ;;  %v2021_v35 = vperm.slane %v1377_v17, 2  ;;  %v2022_v1 = vperm.slane %v1369_v12, 2 }
  0x68   : > { %v662_v26 = vmul.f32 %v1504_v34, %v1514_v28  ;;  %v670_v37 = vmul.f32 %v1494_v31, %v1516_v15  ;;  %v315_v38 = vsel %vm286_vm1, %v2001_v20, %v2002_v24  ;;  %v2013_v62 = vperm.slane %v1379_v18, 2 }
  0x69   : > { %v341_v14 = vsel %vm286_vm1, %v2006_v25, %v2007_v19  ;;  %v349_v60 = vmul.f32 %v315_v38, %v217_v11  ;;  %v381_v27 = vmul.f32 %v315_v38, %v243_v44  ;;  %v461_v47 = vsel %vm432_vm5, %v2021_v35, %v2022_v1 }
  0x6a   : > { %v678_v3 = vadd.f32 %v670_v37, %v662_v26  ;;  %v357_v20 = vmul.f32 %v341_v14, %v243_v44  ;;  %v373_v24 = vmul.f32 %v341_v14, %v217_v11  ;;  %v2014_v9 = vperm.slane %v1381_v21, 2 }
  0x6b   : > { %v2009_v30 = vperm.slane %v1397_v36, 2  ;;  %v2010_v23 = vperm.slane %v1395_v33, 2  ;;  %v2011_v25 = vperm.slane %v1405_v4, 2  ;;  %v2012_v38 = vperm.slane %v1407_v39, 2 }
  0x6c   : > { %771 = vmatpush.msra.mxu1 %v678_v3  ;;  %v365_v19 = vsub.f32 %v349_v60, %v357_v20  ;;  %v389_v29 = vadd.f32 %v381_v27, %v373_v24  ;;  %v487_v11 = vsel %vm432_vm5, %v2013_v62, %v2014_v9  ;;  %v2019_v14 = vperm.slane %v1317_v5, 3 }
  0x6d   : > { %v1570_v44 = vsel %vm1358_vm7, %v2009_v30, %v2010_v23  ;;  %v1578_v3 = vsel %vm1358_vm7, %v2011_v25, %v2012_v38  ;;  %v2020_v60 = vperm.slane %v1315_v43, 3  ;;  %v2015_v27 = vperm.slane %v1319_v45, 3 }
  0x6e   : > { %v495_v20 = vmul.f32 %v461_v47, %v365_v19  ;;  %v503_v24 = vmul.f32 %v487_v11, %v389_v29  ;;  %v519_v26 = vmul.f32 %v487_v11, %v365_v19  ;;  %v527_v37 = vmul.f32 %v461_v47, %v389_v29 }
  0x6f   : > { %v218_v30 = vsel %vm188_vm15, %v2019_v14, %v2020_v60  ;;  %v2016_v23 = vperm.slane %v1328_v50, 3  ;;  %v2017_v25 = vperm.slane %v1324_v48, 3  ;;  %v2018_v38 = vperm.slane %v1322_v46, 3 }
  0x70   : > { %v1591_v62 = vsub.f32 %v495_v20, %v503_v24  ;;  %v1593_v9 = vadd.f32 %v527_v37, %v519_v26  ;;  %v2024_v19 = vperm.slane %v1326_v49, 3  ;;  %v2025_v29 = vperm.slane %v1337_v55, 3 }
  0x71   : > { %v244_v47 = vsel %vm188_vm15, %v2015_v27, %v2016_v23  ;;  %v316_v11 = vsel %vm286_vm1, %v2017_v25, %v2018_v38  ;;  %v2032_v20 = vperm.slane %v1377_v17, 3  ;;  %v2033_v24 = vperm.slane %v1369_v12, 3 }
  0x72   : > { %v663_v26 = vmul.f32 %v1578_v3, %v1591_v62  ;;  %v671_v37 = vmul.f32 %v1570_v44, %v1593_v9  ;;  %v342_v13 = vsel %vm286_vm1, %v2024_v19, %v2025_v29  ;;  %v350_v27 = vmul.f32 %v316_v11, %v218_v30 }
  0x73   : > { %v358_v23 = vmul.f32 %v342_v13, %v244_v47  ;;  %v374_v25 = vmul.f32 %v342_v13, %v218_v30  ;;  %v382_v38 = vmul.f32 %v316_v11, %v244_v47  ;;  %v462_v14 = vsel %vm432_vm5, %v2032_v20, %v2033_v24 }
  0x74   : > { %v679_v60 = vadd.f32 %v671_v37, %v663_v26  ;;  %v2030_v35 = vperm.slane %v1379_v18, 3  ;;  %v2031_v1 = vperm.slane %v1381_v21, 3  ;;  %v2026_v22 = vperm.slane %v1397_v36, 3 }
  0x75   : > { %v366_v16 = vsub.f32 %v350_v27, %v358_v23  ;;  %v390_v19 = vadd.f32 %v382_v38, %v374_v25  ;;  %v2029_v29 = vperm.slane %v1395_v33, 3  ;;  %v2027_v30 = vperm.slane %v1405_v4, 3 }
  0x76   : > { %800 = vmatpush.msra.mxu2 %v679_v60  ;;  %v488_v47 = vsel %vm432_vm5, %v2030_v35, %v2031_v1  ;;  %v2028_v11 = vperm.slane %v1407_v39, 3  ;;  %v183_v26 = vshra.s32 %v1277_v51, 3  ;;  %v281_v37 = vshra.s32 %v1277_v51, 2 }
  0x77   : > { %v496_v23 = vmul.f32 %v462_v14, %v366_v16  ;;  %v504_v25 = vmul.f32 %v488_v47, %v390_v19  ;;  %v520_v38 = vmul.f32 %v488_v47, %v366_v16  ;;  %v528_v27 = vmul.f32 %v462_v14, %v390_v19 }
  0x78   : > { %v1647_v60 = vsel %vm1358_vm7, %v2026_v22, %v2029_v29  ;;  %v1655_v32 = vsel %vm1358_vm7, %v2027_v30, %v2028_v11  ;;  %v1657_v13 = vand.u32 1, %v183_v26  ;;  %v1659_v16 = vand.u32 1, %v281_v37 }
  0x79   : > { %v1661_v14 = vsub.f32 %v496_v23, %v504_v25  ;;  %v1663_v19 = vadd.f32 %v528_v27, %v520_v38  ;;  %v427_v47 = vshra.s32 %v1277_v51, 1  ;;  %v573_v22 = vand.u32 1, %v1277_v51 }
  0x7a   : > { %vm187_vm8 = vcmp.eq.s32.totalorder %v1657_v13, 1  ;;  %vm285_vm9 = vcmp.eq.s32.totalorder %v1659_v16, 1  ;;  %v1671_v8 = vmul.f32 %v1431_v7, %v1419_v59  ;;  %v1675_v26 = vmul.f32 %v1442_v10, %v1421_v63 }
  0x7b   : > { %v664_v37 = vmul.f32 %v1655_v32, %v1661_v14  ;;  %v672_v23 = vmul.f32 %v1647_v60, %v1663_v19  ;;  %v211_v51 = vsel %vm187_vm8, %v194_v52, %v203_v53  ;;  %v237_v59 = vsel %vm187_vm8, %v220_v54, %v229_v61 }
  0x7c   : > { %v309_v63 = vsel %vm285_vm9, %v292_v56, %v301_v57  ;;  %v335_v52 = vsel %vm285_vm9, %v318_v58, %v327_v6  ;;  %v1705_v53 = vand.u32 1, %v427_v47  ;;  %vm1707_vm10 = vcmp.eq.s32.totalorder %v573_v22, 1 }
  0x7d   : > { %v680_v54 = vadd.f32 %v672_v23, %v664_v37  ;;  %v343_v61 = vmul.f32 %v309_v63, %v211_v51  ;;  %v351_v10 = vmul.f32 %v335_v52, %v237_v59  ;;  %v367_v25 = vmul.f32 %v335_v52, %v211_v51 }
  0x7e   : > { %v375_v38 = vmul.f32 %v309_v63, %v237_v59  ;;  %vm431_vm11 = vcmp.eq.s32.totalorder %v1705_v53, 1  ;;  %v1718_v56 = vsel %vm1707_vm10, %v582_v40, %v591_v41  ;;  %v1726_v57 = vsel %vm1707_vm10, %v608_v42, %v617_v2 }
  0x7f   : > { %2042 = vst [vmem:[#allocation6_spill] sm:$0xff] %v1726_v57  ;;  %829 = vmatpush.msra.mxu3 %v680_v54  ;;  %v359_v58 = vsub.f32 %v343_v61, %v351_v10  ;;  %v2043_v6 = vperm.slane %v1377_v17, 0  ;;  %v2044_v40 = vperm.slane %v1381_v21, 0  ;;  %v2045_v41 = vperm.slane %v1379_v18, 0 }
  0x80   : > { %v2046_v47 = vperm.slane %v1315_v43, 1  ;;  %v2047_v42 = vperm.slane %v1317_v5, 1  ;;  %v383_v37 = vadd.f32 %v375_v38, %v367_v25  ;;  %v2048_v23 = vperm.slane %v1328_v50, 1 }
  0x81   : > { %v455_v22 = vsel %vm431_vm11, %v2043_v6, %v447_v0  ;;  %v481_v27 = vsel %vm431_vm11, %v2045_v41, %v2044_v40  ;;  %v2049_v51 = vperm.slane %v1319_v45, 1  ;;  %v2050_v59 = vperm.slane %v1322_v46, 1 }
  0x82   : > { %v212_v2 = vsel %vm187_vm8, %v2047_v42, %v2046_v47  ;;  %v2051_v63 = vperm.slane %v1324_v48, 1  ;;  %v2052_v54 = vperm.slane %v1337_v55, 1  ;;  %v2053_v61 = vperm.slane %v1326_v49, 1 }
  0x83   : > { %v238_v0 = vsel %vm187_vm8, %v2049_v51, %v2048_v23  ;;  %v489_v25 = vmul.f32 %v455_v22, %v359_v58  ;;  %v513_v38 = vmul.f32 %v481_v27, %v359_v58  ;;  %v497_v41 = vmul.f32 %v481_v27, %v383_v37 }
  0x84   : > { %v310_v52 = vsel %vm285_vm9, %v2051_v63, %v2050_v59  ;;  %v336_v10 = vsel %vm285_vm9, %v2053_v61, %v2052_v54  ;;  %v521_v47 = vmul.f32 %v455_v22, %v383_v37  ;;  %v2054_v30 = vperm.slane %v1369_v12, 1 }
  0x85   : > { %v344_v6 = vmul.f32 %v310_v52, %v212_v2  ;;  %v352_v40 = vmul.f32 %v336_v10, %v238_v0  ;;  %v368_v42 = vmul.f32 %v336_v10, %v212_v2  ;;  %v376_v23 = vmul.f32 %v310_v52, %v238_v0 }
  0x86   : > { %v2055_v59 = vperm.slane %v1377_v17, 1  ;;  %v2056_v11 = vperm.slane %v1381_v21, 1  ;;  %v2057_v54 = vperm.slane %v1379_v18, 1  ;;  %v2058_v27 = vperm.slane %v1395_v33, 1 }
  0x87   : > { %v360_v51 = vsub.f32 %v344_v6, %v352_v40  ;;  %v2059_v22 = vperm.slane %v1397_v36, 1  ;;  %v1784_v37 = vsub.f32 %v489_v25, %v497_v41  ;;  %v1786_v0 = vadd.f32 %v521_v47, %v513_v38 }
  0x88   : > { %v456_v63 = vsel %vm431_vm11, %v2055_v59, %v2054_v30  ;;  %v482_v58 = vsel %vm431_vm11, %v2057_v54, %v2056_v11  ;;  %v384_v30 = vadd.f32 %v376_v23, %v368_v42  ;;  %v2061_v52 = vperm.slane %v1407_v39, 1 }
  0x89   : > { %v1782_v2 = vsel %vm1707_vm10, %v2059_v22, %v2058_v27  ;;  %2060 = vst [vmem:[#allocation7_spill] sm:$0xff] %v1786_v0  ;;  %v2062_v61 = vperm.slane %v1405_v4, 1  ;;  %v490_v10 = vmul.f32 %v456_v63, %v360_v51  ;;  %v514_v6 = vmul.f32 %v482_v58, %v360_v51 }
  0x8a   : > { %v2063_v40 = vperm.slane %v1315_v43, 2  ;;  %v2064_v59 = vperm.slane %v1317_v5, 2  ;;  %v2065_v38 = vperm.slane %v1328_v50, 2  ;;  %v2066_v41 = vperm.slane %v1319_v45, 2 }
  0x8b   : > { %v1794_v11 = vsel %vm1707_vm10, %v2062_v61, %v2061_v52  ;;  %v657_v42 = vmul.f32 %v1726_v57, %v1784_v37  ;;  %v665_v23 = vmul.f32 %v1718_v56, %v1786_v0  ;;  %v498_v51 = vmul.f32 %v482_v58, %v384_v30 }
  0x8c   : > { %v213_v25 = vsel %vm187_vm8, %v2064_v59, %v2063_v40  ;;  %v239_v47 = vsel %vm187_vm8, %v2066_v41, %v2065_v38  ;;  %v522_v54 = vmul.f32 %v456_v63, %v384_v30  ;;  %v2067_v27 = vperm.slane %v1322_v46, 2 }
  0x8d   : > { %v2068_v22 = vperm.slane %v1324_v48, 2  ;;  %v2069_v61 = vperm.slane %v1337_v55, 2  ;;  %v2070_v40 = vperm.slane %v1326_v49, 2  ;;  %v2071_v38 = vperm.slane %v1369_v12, 2 }
  0x8e   : > { %v2072_v41 = vperm.slane %v1377_v17, 2  ;;  %v2073_v58 = vperm.slane %v1381_v21, 2  ;;  %v2074_v30 = vperm.slane %v1379_v18, 2  ;;  %v506_v29 = vsub.f32 %v490_v10, %v498_v51 }
  0x8f   : > { %v311_v52 = vsel %vm285_vm9, %v2068_v22, %v2067_v27  ;;  %v337_v59 = vsel %vm285_vm9, %v2070_v40, %v2069_v61  ;;  %v673_v22 = vadd.f32 %v665_v23, %v657_v42  ;;  %v530_v35 = vadd.f32 %v522_v54, %v514_v6 }
  0x90   : > { %v457_v63 = vsel %vm431_vm11, %v2072_v41, %v2071_v38  ;;  %v483_v27 = vsel %vm431_vm11, %v2074_v30, %v2073_v58  ;;  %v345_v1 = vmul.f32 %v311_v52, %v213_v25  ;;  %v353_v20 = vmul.f32 %v337_v59, %v239_v47 }
  0x91   : > { %v369_v61 = vmul.f32 %v337_v59, %v213_v25  ;;  %v377_v40 = vmul.f32 %v311_v52, %v239_v47  ;;  %v2075_v24 = vperm.slane %v1395_v33, 2  ;;  %v2076_v57 = vperm.slane %v1397_v36, 2  ;;  %743 = vmatpush.msra.mxu0 %v673_v22 }
  0x92   : > { %v658_v41 = vmul.f32 %v1794_v11, %v506_v29  ;;  %v666_v0 = vmul.f32 %v1782_v2, %v530_v35  ;;  %v2077_v42 = vperm.slane %v1407_v39, 2  ;;  %v2078_v10 = vperm.slane %v1405_v4, 2 }
  0x93   : > { %v601_v38 = vsel %vm1707_vm10, %v2076_v57, %v2075_v24  ;;  %v2079_v25 = vperm.slane %v1315_v43, 3  ;;  %v2080_v47 = vperm.slane %v1317_v5, 3  ;;  %v361_v24 = vsub.f32 %v345_v1, %v353_v20 }
  0x94   : > { %v627_v6 = vsel %vm1707_vm10, %v2078_v10, %v2077_v42  ;;  %v385_v57 = vadd.f32 %v377_v40, %v369_v61  ;;  %v2081_v51 = vperm.slane %v1328_v50, 3  ;;  %v2082_v54 = vperm.slane %v1319_v45, 3 }
  0x95   : > { %v214_v23 = vsel %vm187_vm8, %v2080_v47, %v2079_v25  ;;  %v2083_v59 = vperm.slane %v1322_v46, 3  ;;  %v2084_v58 = vperm.slane %v1324_v48, 3  ;;  %v674_v5 = vadd.f32 %v666_v0, %v658_v41 }
  0x96   : > { %v240_v52 = vsel %vm187_vm8, %v2082_v54, %v2081_v51  ;;  %v2085_v30 = vperm.slane %v1337_v55, 3  ;;  %v2086_v1 = vperm.slane %v1326_v49, 3  ;;  %v491_v22 = vmul.f32 %v457_v63, %v361_v24 }
  0x97   : > { %v312_v43 = vsel %vm285_vm9, %v2084_v58, %v2083_v59  ;;  %v499_v13 = vmul.f32 %v483_v27, %v385_v57  ;;  %v515_v61 = vmul.f32 %v483_v27, %v361_v24  ;;  %v523_v40 = vmul.f32 %v457_v63, %v385_v57  ;;  %772 = vmatpush.msra.mxu1 %v674_v5  ;;  %v2096_v58 = vld [vmem:[#allocation6_spill] sm:$0xff] }
  0x98   : > { %v338_v50 = vsel %vm285_vm9, %v2086_v1, %v2085_v30  ;;  %v346_v20 = vmul.f32 %v312_v43, %v214_v23  ;;  %v378_v45 = vmul.f32 %v312_v43, %v240_v52  ;;  %v2087_v42 = vperm.slane %v1369_v12, 3 }
  0x99   : > { %v354_v46 = vmul.f32 %v338_v50, %v240_v52  ;;  %v370_v48 = vmul.f32 %v338_v50, %v214_v23  ;;  %v2088_v0 = vperm.slane %v1377_v17, 3  ;;  %v2089_v49 = vperm.slane %v1381_v21, 3 }
  0x9a   : > { %v2090_v16 = vperm.slane %v1379_v18, 3  ;;  %v507_v10 = vsub.f32 %v491_v22, %v499_v13  ;;  %v531_v27 = vadd.f32 %v523_v40, %v515_v61  ;;  %v2091_v63 = vperm.slane %v1395_v33, 3 }
  0x9b   : > { %v458_v55 = vsel %vm431_vm11, %v2088_v0, %v2087_v42  ;;  %v2092_v25 = vperm.slane %v1397_v36, 3  ;;  %v2093_v17 = vperm.slane %v1407_v39, 3  ;;  %v2094_v47 = vperm.slane %v1405_v4, 3 }
  0x9c   : > { %v484_v41 = vsel %vm431_vm11, %v2090_v16, %v2089_v49  ;;  %v362_v18 = vsub.f32 %v346_v20, %v354_v46  ;;  %v386_v23 = vadd.f32 %v378_v45, %v370_v48  ;;  %v653_v53 = vsub.f32 %v1671_v8, %v1675_v26  ;;  %v697_v20 = vld [vmem:[%s1979_s0] sm:$0xff] }
  0x9d   : > { %v602_v12 = vsel %vm1707_vm10, %v2092_v25, %v2091_v63  ;;  %v628_v21 = vsel %vm1707_vm10, %v2094_v47, %v2093_v17  ;;  %v638_v33 = vmul.f32 %v1494_v31, %v1514_v28  ;;  %v659_v24 = vmul.f32 %v627_v6, %v507_v10 }
  0x9e   : > { %v667_v36 = vmul.f32 %v601_v38, %v531_v27  ;;  %v646_v57 = vmul.f32 %v1504_v34, %v1516_v15  ;;  %v639_v39 = vmul.f32 %v1570_v44, %v1591_v62  ;;  %v492_v4 = vmul.f32 %v458_v55, %v362_v18  ;;  %744 = vmatpush.msra.mxu0 %v653_v53  ;;  %v2095_v44 = vld [vmem:[#allocation7_spill] sm:$0xff] }
  0x9f   : > { %v500_v51 = vmul.f32 %v484_v41, %v386_v23  ;;  %v516_v7 = vmul.f32 %v484_v41, %v362_v18  ;;  %v524_v54 = vmul.f32 %v458_v55, %v386_v23  ;;  %v647_v8 = vmul.f32 %v1578_v3, %v1593_v9 }
  0xa0   : > { %v675_v52 = vadd.f32 %v667_v36, %v659_v24  ;;  %v654_v59 = vsub.f32 %v638_v33, %v646_v57  ;;  %v640_v31 = vmul.f32 %v1647_v60, %v1661_v14  ;;  %v648_v34 = vmul.f32 %v1655_v32, %v1663_v19 }
  0xa1   : > { %v508_v28 = vsub.f32 %v492_v4, %v500_v51  ;;  %v532_v26 = vadd.f32 %v524_v54, %v516_v7  ;;  %v633_v62 = vmul.f32 %v1718_v56, %v1784_v37  ;;  %v655_v15 = vsub.f32 %v639_v39, %v647_v8 }
  0xa2   : > { %801 = vmatpush.msra.mxu2 %v675_v52  ;;  %773 = vmatpush.msra.mxu1 %v654_v59  ;;  %v641_v43 = vmul.f32 %v2096_v58, %v2095_v44  ;;  %v634_v5 = vmul.f32 %v1782_v2, %v506_v29  ;;  %v642_v60 = vmul.f32 %v1794_v11, %v530_v35  ;;  %v698_v35 = vld [vmem:[%s1979_s0 + $0x8] sm:$0xff]  ;;  %v699_v11 = vld [vmem:[%s1979_s0 + $0x10] sm:$0xff]  ;;  %vm949_vm15 = vcmask 1041408  }
  0xa3   : > { %v660_v9 = vmul.f32 %v628_v21, %v508_v28  ;;  %v668_v3 = vmul.f32 %v602_v12, %v532_v26  ;;  %v635_v30 = vmul.f32 %v601_v38, %v507_v10  ;;  %v643_v32 = vmul.f32 %v627_v6, %v531_v27  ;;  %v700_v38 = vld [vmem:[%s1979_s0 + $0x18] sm:$0xff] }
  0xa4   : > { %802 = vmatpush.msra.mxu2 %v655_v15  ;;  %v649_v14 = vsub.f32 %v633_v62, %v641_v43  ;;  %v636_v19 = vmul.f32 %v602_v12, %v508_v28  ;;  %v656_v56 = vsub.f32 %v640_v31, %v648_v34  ;;  %v650_v37 = vsub.f32 %v634_v5, %v642_v60 }
  0xa5   : > { %v676_v1 = vadd.f32 %v668_v3, %v660_v9  ;;  %v644_v50 = vmul.f32 %v628_v21, %v532_v26  ;;  %v651_v29 = vsub.f32 %v635_v30, %v643_v32 }
  0xa6   : > { %745 = vmatpush.msra.mxu0 %v649_v14  ;;  %774 = vmatpush.msra.mxu1 %v650_v37 }
  0xa7   : > { %830 = vmatpush.msra.mxu3 %v676_v1  ;;  %v652_v2 = vsub.f32 %v636_v19, %v644_v50  ;;  %803 = vmatpush.msra.mxu2 %v651_v29 }
  0xa8   : > { %1042 = vmatmul.msk.f32.vlgmr.msra.gmra.mxu0 %vm717_vm12, %v697_v20  ;;  %1046 = vmatmul.msk.f32.vlgmr.msra.gmra.mxu1 %vm717_vm12, %v697_v20 }
  0xa9   : > { %831 = vmatpush.msra.mxu3 %v656_v56  ;;  %1050 = vmatmul.msk.f32.vlgmr.msra.gmra.mxu2 %vm717_vm12, %v697_v20 }
  0xab   : > { %832 = vmatpush.msra.mxu3 %v652_v2 }
  0xac   : > { %1054 = vmatmul.msk.f32.vlgmr.msra.gmra.mxu3 %vm717_vm12, %v697_v20 }
  0xb0   : > { %1043 = vmatmul.msk.f32.gmra.mxu0 %vm717_vm12, %v698_v35  ;;  %1047 = vmatmul.msk.f32.gmra.mxu1 %vm717_vm12, %v698_v35 }
  0xb1   : > { %1051 = vmatmul.msk.f32.gmra.mxu2 %vm717_vm12, %v698_v35 }
  0xb4   : > { %1055 = vmatmul.msk.f32.gmra.mxu3 %vm717_vm12, %v698_v35 }
  0xb8   : > { %1044 = vmatmul.msk.f32.gmra.mxu0 %vm717_vm12, %v699_v11  ;;  %1048 = vmatmul.msk.f32.gmra.mxu1 %vm717_vm12, %v699_v11 }
  0xb9   : > { %1052 = vmatmul.msk.f32.gmra.mxu2 %vm717_vm12, %v699_v11 }
  0xbc   : > { %1056 = vmatmul.msk.f32.gmra.mxu3 %vm717_vm12, %v699_v11 }
  0xc0   : > { %1045 = vmatmul.msk.f32.gmra.mxu0 %vm717_vm12, %v700_v38  ;;  %1049 = vmatmul.msk.f32.gmra.mxu1 %vm717_vm12, %v700_v38 }
  0xc1   : > { %1053 = vmatmul.msk.f32.gmra.mxu2 %vm717_vm12, %v700_v38 }
  0xc4   : > { %1057 = vmatmul.msk.f32.gmra.mxu3 %vm717_vm12, %v700_v38 }
 0x125   : > { %v747_v6 = vpop.f32.mrf.mxu0  ;;  %v776_v45 = vpop.f32.mrf.mxu1 }
 0x126   : > { %v846_v55 = vmul.f32 %v747_v6, %v747_v6  ;;  %v847_v49 = vmul.f32 %v776_v45, %v776_v45 }
 0x12c   : > { %v805_v22 = vpop.f32.mrf.mxu2 }
 0x12d   : > { %v750_v13 = vpop.f32.mrf.mxu0  ;;  %v779_v61 = vpop.f32.mrf.mxu1  ;;  %v848_v21 = vmul.f32 %v805_v22, %v805_v22 }
 0x12e   : > { %v850_v18 = vmul.f32 %v750_v13, %v750_v13  ;;  %v851_v24 = vmul.f32 %v779_v61, %v779_v61 }
 0x12f   : > { %v834_v40 = vpop.f32.mrf.mxu3 }
 0x130   : > { %v849_v39 = vmul.f32 %v834_v40, %v834_v40 }
 0x134   : > { %v808_v46 = vpop.f32.mrf.mxu2 }
 0x135   : > { %v753_v48 = vpop.f32.mrf.mxu0  ;;  %v782_v0 = vpop.f32.mrf.mxu1  ;;  %v852_v9 = vmul.f32 %v808_v46, %v808_v46 }
 0x136   : > { %v854_v42 = vmul.f32 %v753_v48, %v753_v48  ;;  %v855_v41 = vmul.f32 %v782_v0, %v782_v0 }
 0x137   : > { %v837_v16 = vpop.f32.mrf.mxu3 }
 0x138   : > { %v862_v10 = vadd.f32 %v854_v42, %v846_v55  ;;  %v863_v27 = vadd.f32 %v855_v41, %v847_v49  ;;  %v853_v19 = vmul.f32 %v837_v16, %v837_v16 }
 0x13a   : > { %v876_v63 = vrot.slane %v863_v27, 4  ;;  %v870_v25 = vrot.slane %v862_v10, 4 }
 0x13c   : > { %v877_v12 = vadd.f32 %v876_v63, %v863_v27  ;;  %v811_v17 = vpop.f32.mrf.mxu2  ;;  %v871_v54 = vadd.f32 %v870_v25, %v862_v10 }
 0x13d   : > { %v756_v47 = vpop.f32.mrf.mxu0  ;;  %v856_v23 = vmul.f32 %v811_v17, %v811_v17  ;;  %v785_v33 = vpop.f32.mrf.mxu1 }
 0x13e   : > { %v858_v53 = vmul.f32 %v756_v47, %v756_v47  ;;  %v859_v57 = vmul.f32 %v785_v33, %v785_v33  ;;  %v878_v52 = vrot.slane %v877_v12, 2  ;;  %v872_v44 = vrot.slane %v871_v54, 2 }
 0x13f   : > { %v840_v36 = vpop.f32.mrf.mxu3  ;;  %v864_v4 = vadd.f32 %v856_v23, %v848_v21 }
 0x140   : > { %v857_v51 = vmul.f32 %v840_v36, %v840_v36  ;;  %v866_v7 = vadd.f32 %v858_v53, %v850_v18  ;;  %v867_v59 = vadd.f32 %v859_v57, %v851_v24  ;;  %v879_v58 = vadd.f32 %v878_v52, %v877_v12 }
 0x141   : > { %v882_v8 = vrot.slane %v864_v4, 4  ;;  %v873_v50 = vadd.f32 %v872_v44, %v871_v54 }
 0x142   : > { %v865_v31 = vadd.f32 %v857_v51, %v849_v39  ;;  %v894_v28 = vrot.slane %v866_v7, 4  ;;  %v900_v26 = vrot.slane %v867_v59, 4  ;;  %v880_v20 = vrot.slane %v879_v58, 1 }
 0x143   : > { %v883_v34 = vadd.f32 %v882_v8, %v864_v4  ;;  %v874_v61 = vrot.slane %v873_v50, 1 }
 0x144   : > { %v888_v62 = vrot.slane %v865_v31, 4  ;;  %v895_v15 = vadd.f32 %v894_v28, %v866_v7  ;;  %v901_v43 = vadd.f32 %v900_v26, %v867_v59  ;;  %v814_v5 = vpop.f32.mrf.mxu2  ;;  %v881_v40 = vadd.f32 %v880_v20, %v879_v58 }
 0x145   : > { %v860_v60 = vmul.f32 %v814_v5, %v814_v5  ;;  %v884_v1 = vrot.slane %v883_v34, 2  ;;  %v875_v27 = vadd.f32 %v874_v61, %v873_v50 }
 0x146   : > { %v896_v3 = vrot.slane %v895_v15, 2  ;;  %v889_v14 = vadd.f32 %v888_v62, %v865_v31  ;;  %v902_v30 = vrot.slane %v901_v43, 2 }
 0x147   : > { %v843_v32 = vpop.f32.mrf.mxu3  ;;  %v868_v37 = vadd.f32 %v860_v60, %v852_v9  ;;  %v885_v22 = vadd.f32 %v884_v1, %v883_v34  ;;  %v2097_v9 = vlaneseq }
 0x148   : > { %v897_v56 = vadd.f32 %v896_v3, %v895_v15  ;;  %v903_v29 = vadd.f32 %v902_v30, %v901_v43  ;;  %v861_v2 = vmul.f32 %v843_v32, %v843_v32  ;;  %v890_v11 = vrot.slane %v889_v14, 2 }
 0x149   : > { %v906_v35 = vrot.slane %v868_v37, 4  ;;  %v886_v41 = vrot.slane %v885_v22, 1  ;;  %vm954_vm0 = vcmp.lt.s32.totalorder %v2097_v9, 512 }
 0x14a   : > { %v898_v38 = vrot.slane %v897_v56, 1  ;;  %v904_v6 = vrot.slane %v903_v29, 1  ;;  %v869_v45 = vadd.f32 %v861_v2, %v853_v19  ;;  %v891_v0 = vadd.f32 %v890_v11, %v889_v14 }
 0x14b   : > { %v907_v13 = vadd.f32 %v906_v35, %v868_v37  ;;  %v887_v18 = vadd.f32 %v886_v41, %v885_v22 }
 0x14c   : > { %v905_v46 = vadd.f32 %v904_v6, %v903_v29  ;;  %v912_v48 = vrot.slane %v869_v45, 4  ;;  %v899_v55 = vadd.f32 %v898_v38, %v897_v56  ;;  %v892_v17 = vrot.slane %v891_v0, 1 }
 0x14d   : > { %v908_v42 = vrot.slane %v907_v13, 2 }
 0x14e   : > { %v919_v49 = vsub.f32 %v881_v40, %v905_v46  ;;  %v913_v16 = vadd.f32 %v912_v48, %v869_v45  ;;  %v918_v47 = vsub.f32 %v875_v27, %v899_v55  ;;  %v893_v24 = vadd.f32 %v892_v17, %v891_v0 }
 0x14f   : > { %v909_v10 = vadd.f32 %v908_v42, %v907_v13 }
 0x150   : > { %v923_v63 = vmul.f32 2.0, %v919_v49  ;;  %v914_v25 = vrot.slane %v913_v16, 2  ;;  %v922_v36 = vmul.f32 2.0, %v918_v47 }
 0x151   : > { %v910_v12 = vrot.slane %v909_v10, 1 }
 0x152   : > { %v915_v21 = vadd.f32 %v914_v25, %v913_v16  ;;  %1117 = vtanh.f32 %v923_v63 }
 0x153   : > { %v911_v23 = vadd.f32 %v910_v12, %v909_v10 }
 0x154   : > { %v916_v53 = vrot.slane %v915_v21, 1 }
 0x155   : > { %v920_v33 = vsub.f32 %v887_v18, %v911_v23 }
 0x156   : > { %v917_v57 = vadd.f32 %v916_v53, %v915_v21 }
 0x157   : > { %v924_v39 = vmul.f32 2.0, %v920_v33 }
 0x158   : > { %v921_v4 = vsub.f32 %v893_v24, %v917_v57  ;;  %v1118_v51 = vpop.eup %1117 }
 0x159   : > { %1119 = vtanh.f32 %v924_v39  ;;  %v931_v54 = vmul.f32 0.5, %v1118_v51 }
 0x15a   : > { %1121 = vtanh.f32 %v922_v36  ;;  %v925_v7 = vmul.f32 2.0, %v921_v4 }
 0x15b   : > { %v935_v31 = vadd.f32 0.5, %v931_v54 }
 0x15c   : > { %1123 = vtanh.f32 %v925_v7 }
 0x15d   : > { %v942_v44 = vrot.slane %v935_v31, 7 }
 0x15f   : > { %v1120_v52 = vpop.eup %1119 }
 0x160   : > { %v1122_v59 = vpop.eup %1121  ;;  %v932_v8 = vmul.f32 0.5, %v1120_v52 }
 0x161   : > { %v930_v34 = vmul.f32 0.5, %v1122_v59 }
 0x162   : > { %v1124_v28 = vpop.eup %1123  ;;  %v936_v26 = vadd.f32 0.5, %v932_v8 }
 0x163   : > { %v933_v62 = vmul.f32 0.5, %v1124_v28  ;;  %v934_v43 = vadd.f32 0.5, %v930_v34 }
 0x164   : > { %v943_v58 = vrot.slane %v936_v26, 6 }
 0x165   : > { %v937_v15 = vadd.f32 0.5, %v933_v62  ;;  %v946_v3 = vsel %vm945_vm13, %v934_v43, %v942_v44 }
 0x167   : > { %v944_v5 = vrot.slane %v937_v15, 5 }
 0x169   : > { %v948_v60 = vsel %vm947_vm14, %v943_v58, %v944_v5 }
 0x16a   : > { %v950_v14 = vsel %vm949_vm15, %v946_v3, %v948_v60 }
 0x16b   : > { %956 = vst.msk [vmem:[%s137_s17] sm:$0xf] %vm954_vm0, %v950_v14 }
 0x16c   : > { %1152 = shalt.err (!%p1149_p3)
}
 0x16d   : > { %1062 = dma.vmem_to_hbm [thread:$0]  (%p1239_p5), %s971_s22, 64, %s973_s23, %s958_s21  }
 0x16e PF: > { %p1068_p4 = scmp.ge.s32.totalorder %s1187_s12, 2  ;;  %s984_s3 = sand.u32 1, %s1175_s9  }
 0x16f   : > { %s985_s4 = scalar_lea.sflag [#allocation4], %s984_s3 }
 0x170   : > { %p1065_p7 = pnand %p1068_p4, %p1243_p6 }
 0x172   : > { %p1066_p8 = pneg %p1065_p7 }
 0x174   : > { %1170 = dma.done.wait (%p1066_p8), %s985_s4, 64  }
 0x175   : > { %1172 = vsyncadd (%p1066_p8), %s985_s4, 4294967232  ;;  %p12_p9 = scmp.ge.s32.totalorder %s1227_s15, 4   ;;  %s2098_s9 = smov %s1179_s10 }
 0x176   : > { %s2099_s10 = smov %s1183_s11  ;;  %s2100_s11 = smov %s1237_s18 }
 0x177   : > { %s2101_s12 = smov %s1227_s15  ;;  %14 = sbr.rel (!%p12_p9) target bundleno = 3 (0x3), region = 66 }
 0x17c   :  { %991 = vsyncpa [#allocation4], 1 }
 0x17d   :  { %993 = vsyncpa [#allocation4 + $0x1], 1 }

</bundles_post_ra>
